<compile_context>
chip_gen: v5e
topology: v5e:2x2
jax: 0.10.0
libtpu: 0.0.40
codegen_flags: <defaults>
</compile_context>

<pallas_src>
import functools

import jax
import jax.numpy as jnp
from jax.experimental import pallas as pl
from jax.experimental.pallas import tpu as pltpu


def _round_up(x: int, m: int) -> int:
    return ((x + m - 1) // m) * m


def _sublane(dtype) -> int:
    # 8 rows/vreg for 4-byte dtypes, 16 for 2-byte, 32 for 1-byte.
    return max(8, 32 // jnp.dtype(dtype).itemsize)


def _vmem_capacity_bytes() -> int:
    try:
        return int(pltpu.get_tpu_info().vmem_capacity_bytes)
    except Exception:
        return 64 << 20  # conservative default (v7x per-TC VMEM)


def _spec(shape, index_map, *, single_buffer=False):
    """BlockSpec helper; grid-invariant inputs get a single VMEM buffer."""
    if single_buffer:
        try:
            return pl.BlockSpec(shape, index_map, pipeline_mode=pl.Buffered(1))
        except TypeError:  # older API without pipeline_mode
            pass
    return pl.BlockSpec(shape, index_map)


# ----------------------------- kernels -------------------------------------


def _mlp_fused_kernel(x_ref, w1_ref, b1_ref, w2_ref, b2_ref, w3_ref, b3_ref, o_ref):
    # All three layers fused; weights fully resident in VMEM.
    x = x_ref[...]  # native dtype; MXU accumulates in f32 via preferred_element_type
    h1 = jnp.dot(x, w1_ref[...], preferred_element_type=jnp.float32) + b1_ref[...]
    h1 = jnp.maximum(h1, 0.0).astype(x.dtype)
    h2 = jnp.dot(h1, w2_ref[...], preferred_element_type=jnp.float32) + b2_ref[...]
    h2 = jnp.maximum(h2, 0.0).astype(x.dtype)
    out = jnp.dot(h2, w3_ref[...], preferred_element_type=jnp.float32) + b3_ref[...]
    o_ref[...] = out.astype(o_ref.dtype)


def _mlp_tiled_kernel(x_ref, w1_ref, b1_ref, w2_ref, b2_ref, w3_ref, b3_ref, o_ref,
                      acc_ref):
    # Hidden dim tiled: step j computes h1 chunk j (N-tile of fc1) and accumulates
    # its contribution to fc2 (K-tile) into acc_ref; last step applies bias+ReLU
    # and the final projection.  w1/w2 chunks stream through a double-buffered
    # pipeline overlapped with the MXU work.
    j = pl.program_id(1)

    @pl.when(j == 0)
    def _():
        acc_ref[...] = jnp.zeros_like(acc_ref)

    x = x_ref[...]
    h1 = jnp.dot(x, w1_ref[...], preferred_element_type=jnp.float32) + b1_ref[...]
    h1 = jnp.maximum(h1, 0.0).astype(x.dtype)
    acc_ref[...] += jnp.dot(h1, w2_ref[...], preferred_element_type=jnp.float32)

    @pl.when(j == pl.num_programs(1) - 1)
    def _():
        h2 = jnp.maximum(acc_ref[...] + b2_ref[...], 0.0).astype(x.dtype)
        out = jnp.dot(h2, w3_ref[...], preferred_element_type=jnp.float32) + b3_ref[...]
        o_ref[...] = out.astype(o_ref.dtype)


# ----------------------------- wrapper --------------------------------------


@functools.partial(jax.jit, static_argnames=("block_b", "hid_tile", "out_features"))
def mlp_forward(x, w1, b1, w2, b2, w3, b3, block_b=256, hid_tile=512,
                out_features=None):
    if b1.ndim == 1:
        b1 = b1.reshape(1, -1)
    if b2.ndim == 1:
        b2 = b2.reshape(1, -1)
    if b3.ndim == 1:
        b3 = b3.reshape(1, -1)

    B, n_in = x.shape
    n_out = int(out_features) if out_features is not None else int(w3.shape[1])

    # Lane-dense padded dims (multiples of 128); honor already-padded params.
    n_in_p = _round_up(max(n_in, w1.shape[0]), 128)
    n_hid_p = _round_up(max(w1.shape[1], w2.shape[0], w2.shape[1], w3.shape[0]), 128)
    n_out_p = _round_up(w3.shape[1], 128)

    # Batch tile: dtype-aware sublane rounding; prefer >= 2 grid steps so the
    # "parallel" batch axis can shard across both TensorCores on v7x.
    sub = _sublane(x.dtype)
    B_aligned = _round_up(B, sub)
    if B_aligned > sub:
        bb = min(block_b, _round_up(-(-B // 2), sub))
    else:
        bb = B_aligned
    bb = _round_up(max(bb, sub), sub)
    B_p = _round_up(B, bb)
    batch_steps = B_p // bb

    x_isz = jnp.dtype(x.dtype).itemsize
    w_isz = jnp.dtype(w1.dtype).itemsize
    b_isz = jnp.dtype(b1.dtype).itemsize

    # Hidden-chunk width for the tiled path: largest multiple-of-128 divisor of
    # n_hid_p not exceeding hid_tile (no extra zero-FLOP padding).
    m = n_hid_p // 128
    th = 128
    for d in range(1, m + 1):
        if m % d == 0 and 128 * d <= max(hid_tile, 128):
            th = 128 * d
    n_chunks = n_hid_p // th

    vmem_cap = _vmem_capacity_bytes()
    usable = vmem_cap - (8 << 20)

    # Fused-path VMEM estimate: weights resident once (Buffered(1)),
    # x/out double-buffered, f32 h1/h2 temporaries.
    w_bytes = (n_in_p * n_hid_p + n_hid_p * n_hid_p + n_hid_p * n_out_p) * w_isz
    b_bytes = (2 * n_hid_p + n_out_p) * b_isz
    vmem_fused = (w_bytes + b_bytes
                  + 2 * bb * (n_in_p + n_out_p) * x_isz
                  + 2 * bb * n_hid_p * 4)

    # Tiled path when weights don't fit comfortably OR there is only one batch
    # grid step (otherwise the full weight DMA sits serially in the prologue).
    use_tiled = n_chunks >= 2 and (vmem_fused > usable // 2 or batch_steps == 1)

    # Zero-padding (guarded: no-op if already aligned / pre-padded).
    def _pad2(a, r, c):
        pr, pc = r - a.shape[0], c - a.shape[1]
        return a if (pr == 0 and pc == 0) else jnp.pad(a, ((0, pr), (0, pc)))

    xp = _pad2(x, B_p, n_in_p)
    w1p = _pad2(w1, n_in_p, n_hid_p)
    b1p = _pad2(b1, 1, n_hid_p)
    w2p = _pad2(w2, n_hid_p, n_hid_p)
    b2p = _pad2(b2, 1, n_hid_p)
    w3p = _pad2(w3, n_hid_p, n_out_p)
    b3p = _pad2(b3, 1, n_out_p)

    flops = 2 * B_p * (n_in_p * n_hid_p + n_hid_p * n_hid_p + n_hid_p * n_out_p)
    bytes_accessed = B_p * (n_in_p + n_out_p) * x_isz + w_bytes + b_bytes
    cost = pl.CostEstimate(flops=flops, transcendentals=0,
                           bytes_accessed=bytes_accessed)

    if use_tiled:
        vmem_est = (2 * bb * n_in_p * x_isz                      # x (double-buffered)
                    + 2 * (n_in_p * th + th * n_hid_p) * w_isz   # w1/w2 chunks (x2)
                    + 2 * th * b_isz                             # b1 chunk (x2)
                    + (n_hid_p + n_out_p) * b_isz                # b2, b3 (single)
                    + n_hid_p * n_out_p * w_isz                  # w3 (single)
                    + 2 * bb * n_out_p * x_isz                   # out (x2)
                    + 3 * bb * n_hid_p * 4)                      # acc + f32 temporaries
        grid = (batch_steps, n_chunks)
        in_specs = [
            pl.BlockSpec((bb, n_in_p), lambda i, j: (i, 0)),
            pl.BlockSpec((n_in_p, th), lambda i, j: (0, j)),
            pl.BlockSpec((1, th), lambda i, j: (0, j)),
            pl.BlockSpec((th, n_hid_p), lambda i, j: (j, 0)),
            _spec((1, n_hid_p), lambda i, j: (0, 0), single_buffer=True),
            _spec((n_hid_p, n_out_p), lambda i, j: (0, 0), single_buffer=True),
            _spec((1, n_out_p), lambda i, j: (0, 0), single_buffer=True),
        ]
        out_specs = pl.BlockSpec((bb, n_out_p), lambda i, j: (i, 0))
        scratch_shapes = [pltpu.VMEM((bb, n_hid_p), jnp.float32)]
        dims = ("parallel", "arbitrary")
        kernel = _mlp_tiled_kernel
    else:
        vmem_est = vmem_fused
        grid = (batch_steps,)
        in_specs = [
            pl.BlockSpec((bb, n_in_p), lambda i: (i, 0)),
            _spec((n_in_p, n_hid_p), lambda i: (0, 0), single_buffer=True),
            _spec((1, n_hid_p), lambda i: (0, 0), single_buffer=True),
            _spec((n_hid_p, n_hid_p), lambda i: (0, 0), single_buffer=True),
            _spec((1, n_hid_p), lambda i: (0, 0), single_buffer=True),
            _spec((n_hid_p, n_out_p), lambda i: (0, 0), single_buffer=True),
            _spec((1, n_out_p), lambda i: (0, 0), single_buffer=True),
        ]
        out_specs = pl.BlockSpec((bb, n_out_p), lambda i: (i, 0))
        scratch_shapes = []
        dims = ("parallel",)
        kernel = _mlp_fused_kernel

    compiler_kwargs = dict(dimension_semantics=dims)
    if vmem_est > (32 << 20):
        # Hardware-derived cap (<= physical VMEM minus headroom; works on v7x's 64 MiB).
        compiler_kwargs["vmem_limit_bytes"] = int(
            max(32 << 20, min(vmem_est + (8 << 20), vmem_cap - (4 << 20))))

    out_p = pl.pallas_call(
        kernel,
        out_shape=jax.ShapeDtypeStruct((B_p, n_out_p), x.dtype),
        grid_spec=pltpu.PrefetchScalarGridSpec(
            num_scalar_prefetch=0,
            grid=grid,
            in_specs=in_specs,
            out_specs=out_specs,
            scratch_shapes=scratch_shapes,
        ),
        compiler_params=pltpu.CompilerParams(**compiler_kwargs),
        cost_estimate=cost,
    )(xp, w1p, b1p, w2p, b2p, w3p, b3p)

    if B_p == B and n_out_p == n_out:
        return out_p
    return out_p[:B, :n_out]


# ----------------------------- init helpers ---------------------------------


def xavier_normal(key, fan_in, fan_out, dtype=jnp.float32):
    # Matches torch.nn.init.xavier_normal_: std = sqrt(2 / (fan_in + fan_out))
    std = (2.0 / (fan_in + fan_out)) ** 0.5
    return std * jax.random.normal(key, (fan_in, fan_out), dtype=dtype)


def init_mlp_params(key, n_in, n_hid, n_out, dtype=jnp.float32):
    k1, k2, k3 = jax.random.split(key, 3)
    w1 = xavier_normal(k1, n_in, n_hid, dtype)
    w2 = xavier_normal(k2, n_hid, n_hid, dtype)
    w3 = xavier_normal(k3, n_hid, n_out, dtype)
    # PyTorch code fills all biases with 0.1
    b1 = jnp.full((1, n_hid), 0.1, dtype=dtype)
    b2 = jnp.full((1, n_hid), 0.1, dtype=dtype)
    b3 = jnp.full((1, n_out), 0.1, dtype=dtype)
    return w1, b1, w2, b2, w3, b3


def pad_mlp_params(w1, b1, w2, b2, w3, b3):
    """Zero-pad params to lane multiples of 128 ONCE at init so mlp_forward's
    per-call padding (and the associated HBM rewrite of every weight) is a no-op.
    Pass the true n_out via mlp_forward(..., out_features=n_out)."""
    n_in, n_hid = w1.shape
    n_out = w3.shape[1]
    n_in_p, n_hid_p, n_out_p = (_round_up(n_in, 128), _round_up(n_hid, 128),
                                _round_up(n_out, 128))
    pad2 = lambda a, r, c: jnp.pad(a, ((0, r - a.shape[0]), (0, c - a.shape[1])))
    return (pad2(w1, n_in_p, n_hid_p), pad2(b1.reshape(1, -1), 1, n_hid_p),
            pad2(w2, n_hid_p, n_hid_p), pad2(b2.reshape(1, -1), 1, n_hid_p),
            pad2(w3, n_hid_p, n_out_p), pad2(b3.reshape(1, -1), 1, n_out_p))


if __name__ == "__main__":
    key = jax.random.PRNGKey(0)
    k_x, k_p, k_x2, k_p2 = jax.random.split(key, 4)

    def reference(x, w1, b1, w2, b2, w3, b3):
        h1 = jnp.maximum(x @ w1 + b1, 0.0)
        h2 = jnp.maximum(h1 @ w2 + b2, 0.0)
        return h2 @ w3 + b3

    # --- Test 1: small config -> fused single-grid-axis path --------------------
    batch, n_in, n_hid, n_out = 8, 32, 64, 16
    x = jax.random.normal(k_x, (batch, n_in), dtype=jnp.float32)
    params = init_mlp_params(k_p, n_in, n_hid, n_out)
    out = jax.block_until_ready(mlp_forward(x, *params))
    ref = reference(x, *params)
    assert out.shape == (batch, n_out)
    assert jnp.allclose(out, ref, atol=1e-5, rtol=1e-5), "fused path mismatch"

    # --- Test 2: hidden-tiled (reduction) path with pre-padded params -----------
    batch2, n_in2, n_hid2, n_out2 = 8, 32, 256, 16
    x2 = jax.random.normal(k_x2, (batch2, n_in2), dtype=jnp.float32)
    raw2 = init_mlp_params(k_p2, n_in2, n_hid2, n_out2)
    padded2 = pad_mlp_params(*raw2)
    out2 = jax.block_until_ready(
        mlp_forward(x2, *padded2, hid_tile=128, out_features=n_out2))
    ref2 = reference(x2, *raw2)
    assert out2.shape == (batch2, n_out2)
    assert jnp.allclose(out2, ref2, atol=1e-4, rtol=1e-4), "tiled path mismatch"

    print("KERNEL_OK")
</pallas_src>

<mosaic_0001>
module attributes {stable_mosaic.version = 11 : i64} {
  func.func @_mlp_fused_kernel(%arg0: i32, %arg1: memref<8x128xf32, #tpu.memory_space<vmem>>, %arg2: memref<128x128xf32, #tpu.memory_space<vmem>>, %arg3: memref<1x128xf32, #tpu.memory_space<vmem>>, %arg4: memref<128x128xf32, #tpu.memory_space<vmem>>, %arg5: memref<1x128xf32, #tpu.memory_space<vmem>>, %arg6: memref<128x128xf32, #tpu.memory_space<vmem>>, %arg7: memref<1x128xf32, #tpu.memory_space<vmem>>, %arg8: memref<8x128xf32, #tpu.memory_space<vmem>>) attributes {dimension_semantics = [#tpu.dimension_semantics<parallel>], iteration_bounds = array<i64: 1>, scalar_prefetch = 0 : i64, scratch_operands = 0 : i64, tpu.core_type = #tpu.core_type<tc>, window_params = [{transform_indices = @transform_0, window_bounds = array<i64: 8, 128>}, {pipeline_mode = #tpu.pipeline_mode<synchronous>, transform_indices = @transform_1, window_bounds = array<i64: 128, 128>}, {pipeline_mode = #tpu.pipeline_mode<synchronous>, transform_indices = @transform_2, window_bounds = array<i64: 1, 128>}, {pipeline_mode = #tpu.pipeline_mode<synchronous>, transform_indices = @transform_3, window_bounds = array<i64: 128, 128>}, {pipeline_mode = #tpu.pipeline_mode<synchronous>, transform_indices = @transform_4, window_bounds = array<i64: 1, 128>}, {pipeline_mode = #tpu.pipeline_mode<synchronous>, transform_indices = @transform_5, window_bounds = array<i64: 128, 128>}, {pipeline_mode = #tpu.pipeline_mode<synchronous>, transform_indices = @transform_6, window_bounds = array<i64: 1, 128>}, {transform_indices = @transform_7, window_bounds = array<i64: 8, 128>}]} {
    %c0 = arith.constant 0 : index
    %c0_0 = arith.constant 0 : index
    %0 = vector.load %arg1[%c0, %c0_0] : memref<8x128xf32, #tpu.memory_space<vmem>>, vector<8x128xf32>
    %c0_1 = arith.constant 0 : index
    %c0_2 = arith.constant 0 : index
    %1 = vector.load %arg2[%c0_1, %c0_2] : memref<128x128xf32, #tpu.memory_space<vmem>>, vector<128x128xf32>
    %cst = arith.constant dense<0.000000e+00> : vector<8x128xf32>
    %2 = tpu.matmul %0, %1, %cst {dimension_numbers = #tpu.dot_dimension_numbers<[1], [0], [0], [1], [0, 0, 1, 1], [], []>} : vector<8x128xf32>, vector<128x128xf32>, vector<8x128xf32> -> vector<8x128xf32>
    %c0_3 = arith.constant 0 : index
    %c0_4 = arith.constant 0 : index
    %3 = vector.load %arg3[%c0_3, %c0_4] : memref<1x128xf32, #tpu.memory_space<vmem>>, vector<1x128xf32>
    %4 = vector.broadcast %3 : vector<1x128xf32> to vector<8x128xf32>
    %5 = arith.addf %2, %4 : vector<8x128xf32>
    %cst_5 = arith.constant 0.000000e+00 : f32
    %6 = vector.broadcast %cst_5 : f32 to vector<8x128xf32>
    %7 = arith.maximumf %5, %6 : vector<8x128xf32>
    %c0_6 = arith.constant 0 : index
    %c0_7 = arith.constant 0 : index
    %8 = vector.load %arg4[%c0_6, %c0_7] : memref<128x128xf32, #tpu.memory_space<vmem>>, vector<128x128xf32>
    %cst_8 = arith.constant dense<0.000000e+00> : vector<8x128xf32>
    %9 = tpu.matmul %7, %8, %cst_8 {dimension_numbers = #tpu.dot_dimension_numbers<[1], [0], [0], [1], [0, 0, 1, 1], [], []>} : vector<8x128xf32>, vector<128x128xf32>, vector<8x128xf32> -> vector<8x128xf32>
    %c0_9 = arith.constant 0 : index
    %c0_10 = arith.constant 0 : index
    %10 = vector.load %arg5[%c0_9, %c0_10] : memref<1x128xf32, #tpu.memory_space<vmem>>, vector<1x128xf32>
    %11 = vector.broadcast %10 : vector<1x128xf32> to vector<8x128xf32>
    %12 = arith.addf %9, %11 : vector<8x128xf32>
    %cst_11 = arith.constant 0.000000e+00 : f32
    %13 = vector.broadcast %cst_11 : f32 to vector<8x128xf32>
    %14 = arith.maximumf %12, %13 : vector<8x128xf32>
    %c0_12 = arith.constant 0 : index
    %c0_13 = arith.constant 0 : index
    %15 = vector.load %arg6[%c0_12, %c0_13] : memref<128x128xf32, #tpu.memory_space<vmem>>, vector<128x128xf32>
    %cst_14 = arith.constant dense<0.000000e+00> : vector<8x128xf32>
    %16 = tpu.matmul %14, %15, %cst_14 {dimension_numbers = #tpu.dot_dimension_numbers<[1], [0], [0], [1], [0, 0, 1, 1], [], []>} : vector<8x128xf32>, vector<128x128xf32>, vector<8x128xf32> -> vector<8x128xf32>
    %c0_15 = arith.constant 0 : index
    %c0_16 = arith.constant 0 : index
    %17 = vector.load %arg7[%c0_15, %c0_16] : memref<1x128xf32, #tpu.memory_space<vmem>>, vector<1x128xf32>
    %18 = vector.broadcast %17 : vector<1x128xf32> to vector<8x128xf32>
    %19 = arith.addf %16, %18 : vector<8x128xf32>
    %c0_17 = arith.constant 0 : index
    %c0_18 = arith.constant 0 : index
    %20 = vector.load %arg8[%c0_17, %c0_18] : memref<8x128xf32, #tpu.memory_space<vmem>>, vector<8x128xf32>
    tpu.vector_store %arg8[%c0_17, %c0_18], %19 {strides = array<i32>} : memref<8x128xf32, #tpu.memory_space<vmem>>, vector<8x128xf32>,
    return
  }
  func.func @transform_0(%arg0: i32) -> (i32, i32) {
    %c0_i32 = arith.constant 0 : i32
    %c0_i32_0 = arith.constant 0 : i32
    return %arg0, %c0_i32 : i32, i32
  }
  func.func @transform_1(%arg0: i32) -> (i32, i32) {
    %c0_i32 = arith.constant 0 : i32
    %c0_i32_0 = arith.constant 0 : i32
    %c0_i32_1 = arith.constant 0 : i32
    return %c0_i32, %c0_i32_0 : i32, i32
  }
  func.func @transform_2(%arg0: i32) -> (i32, i32) {
    %c0_i32 = arith.constant 0 : i32
    %c0_i32_0 = arith.constant 0 : i32
    %c0_i32_1 = arith.constant 0 : i32
    return %c0_i32, %c0_i32_0 : i32, i32
  }
  func.func @transform_3(%arg0: i32) -> (i32, i32) {
    %c0_i32 = arith.constant 0 : i32
    %c0_i32_0 = arith.constant 0 : i32
    %c0_i32_1 = arith.constant 0 : i32
    return %c0_i32, %c0_i32_0 : i32, i32
  }
  func.func @transform_4(%arg0: i32) -> (i32, i32) {
    %c0_i32 = arith.constant 0 : i32
    %c0_i32_0 = arith.constant 0 : i32
    %c0_i32_1 = arith.constant 0 : i32
    return %c0_i32, %c0_i32_0 : i32, i32
  }
  func.func @transform_5(%arg0: i32) -> (i32, i32) {
    %c0_i32 = arith.constant 0 : i32
    %c0_i32_0 = arith.constant 0 : i32
    %c0_i32_1 = arith.constant 0 : i32
    return %c0_i32, %c0_i32_0 : i32, i32
  }
  func.func @transform_6(%arg0: i32) -> (i32, i32) {
    %c0_i32 = arith.constant 0 : i32
    %c0_i32_0 = arith.constant 0 : i32
    %c0_i32_1 = arith.constant 0 : i32
    return %c0_i32, %c0_i32_0 : i32, i32
  }
  func.func @transform_7(%arg0: i32) -> (i32, i32) {
    %c0_i32 = arith.constant 0 : i32
    %c0_i32_0 = arith.constant 0 : i32
    return %arg0, %c0_i32 : i32, i32
  }
}

</mosaic_0001>

<bundles_post_ra>
// kernel: mlp_forward.1
= control target key start
LH: loop header
LB: loop body
LE: loop exit
PB: predicated region body
PF: predicated region fallthrough
CT: control target
= control target key end

     0   :  { %s397_s0 = inlined_call_operand.vmem [shape: f32[8,128], index: 0, kind: input, shape index: {}]   ;;  %s398_s1 = inlined_call_operand.vmem [shape: f32[128,128], index: 1, kind: input, shape index: {}]   ;;  %s399_s2 = inlined_call_operand.vmem [shape: f32[1,128], index: 2, kind: input, shape index: {}]   ;;  %s400_s3 = inlined_call_operand.vmem [shape: f32[128,128], index: 3, kind: input, shape index: {}]   ;;  %s401_s4 = inlined_call_operand.vmem [shape: f32[1,128], index: 4, kind: input, shape index: {}]   ;;  %s402_s5 = inlined_call_operand.vmem [shape: f32[128,128], index: 5, kind: input, shape index: {}]   ;;  %s403_s6 = inlined_call_operand.vmem [shape: f32[1,128], index: 6, kind: input, shape index: {}]   ;;  %s404_s7 = inlined_call_operand.hbm [shape: f32[8,128], index: 7, kind: output, shape index: {}]  }
   0x1   :  { %v43_v0 = vld [vmem:[%s398_s1 + $0x78] sm:$0xff]  ;;  %v42_v1 = vld [vmem:[%s398_s1 + $0x70] sm:$0xff]  ;;  %v41_v2 = vld [vmem:[%s398_s1 + $0x68] sm:$0xff] }
   0x2   :  { %48 = vmatpush.msra.mxu0 %v43_v0  ;;  %v40_v3 = vld [vmem:[%s398_s1 + $0x60] sm:$0xff]  ;;  %v84_v4 = vld [vmem:[%s400_s3 + $0x78] sm:$0xff]  ;;  %v83_v6 = vld [vmem:[%s400_s3 + $0x70] sm:$0xff] }
   0x3   :  { %v39_v5 = vld [vmem:[%s398_s1 + $0x58] sm:$0xff]  ;;  %89 = vmatpush.msra.mxu1 %v84_v4  ;;  %v82_v7 = vld [vmem:[%s400_s3 + $0x68] sm:$0xff]  ;;  %v38_v8 = vld [vmem:[%s398_s1 + $0x50] sm:$0xff] }
   0x4   :  { %49 = vmatpush.msra.mxu0 %v42_v1  ;;  %v81_v9 = vld [vmem:[%s400_s3 + $0x60] sm:$0xff]  ;;  %v37_v10 = vld [vmem:[%s398_s1 + $0x48] sm:$0xff]  ;;  %v80_v11 = vld [vmem:[%s400_s3 + $0x58] sm:$0xff] }
   0x5   :  { %90 = vmatpush.msra.mxu1 %v83_v6 }
   0x6   :  { %50 = vmatpush.msra.mxu0 %v41_v2 }
   0x7   :  { %91 = vmatpush.msra.mxu1 %v82_v7 }
   0x8   :  { %51 = vmatpush.msra.mxu0 %v40_v3 }
   0xa   :  { %52 = vmatpush.msra.mxu0 %v39_v5 }
   0xc   :  { %53 = vmatpush.msra.mxu0 %v38_v8 }
   0xd   :  { %12 = vsyncpa [#allocation3], 0  ;;  %v36_v12 = vld [vmem:[%s398_s1 + $0x40] sm:$0xff]  ;;  %92 = vmatpush.msra.mxu1 %v81_v9  ;;  %v79_v13 = vld [vmem:[%s400_s3 + $0x50] sm:$0xff]  ;;  %s197_s29 = smov [#allocation2]   ;;  %s158_s10 = sshll.u32 %s404_s7, 4  ;;  %s159_s10 = int_to_ptr.hbm [resolvable:$true] %s158_s10 }
   0xe   :  { %54 = vmatpush.msra.mxu0 %v37_v10  ;;  %v35_v14 = vld [vmem:[%s398_s1 + $0x38] sm:$0xff]  ;;  %v78_v15 = vld [vmem:[%s400_s3 + $0x48] sm:$0xff]  ;;  %v34_v16 = vld [vmem:[%s398_s1 + $0x30] sm:$0xff]  ;;  %s156_s30 = sshll.u32 %s197_s29, 4  ;;  %s157_s30 = int_to_ptr.vmem [resolvable:$true] %s156_s30 }
   0xf   :  { %93 = vmatpush.msra.mxu1 %v80_v11  ;;  %v77_v17 = vld [vmem:[%s400_s3 + $0x40] sm:$0xff]  ;;  %v33_v18 = vld [vmem:[%s398_s1 + $0x28] sm:$0xff]  ;;  %v76_v19 = vld [vmem:[%s400_s3 + $0x38] sm:$0xff] }
  0x10   :  { %55 = vmatpush.msra.mxu0 %v36_v12  ;;  %v32_v20 = vld [vmem:[%s398_s1 + $0x20] sm:$0xff]  ;;  %v75_v21 = vld [vmem:[%s400_s3 + $0x30] sm:$0xff]  ;;  %v31_v22 = vld [vmem:[%s398_s1 + $0x18] sm:$0xff] }
  0x11   :  { %94 = vmatpush.msra.mxu1 %v79_v13  ;;  %v74_v23 = vld [vmem:[%s400_s3 + $0x28] sm:$0xff]  ;;  %v30_v24 = vld [vmem:[%s398_s1 + $0x10] sm:$0xff]  ;;  %v73_v25 = vld [vmem:[%s400_s3 + $0x20] sm:$0xff] }
  0x12   :  { %56 = vmatpush.msra.mxu0 %v35_v14  ;;  %v29_v26 = vld [vmem:[%s398_s1 + $0x8] sm:$0xff]  ;;  %v72_v27 = vld [vmem:[%s400_s3 + $0x18] sm:$0xff]  ;;  %v28_v28 = vld [vmem:[%s398_s1] sm:$0xff] }
  0x13   :  { %95 = vmatpush.msra.mxu1 %v78_v15  ;;  %v27_v29 = vld [vmem:[%s397_s0] sm:$0xff]  ;;  %v71_v30 = vld [vmem:[%s400_s3 + $0x10] sm:$0xff]  ;;  %v70_v31 = vld [vmem:[%s400_s3 + $0x8] sm:$0xff] }
  0x14   :  { %57 = vmatpush.msra.mxu0 %v34_v16  ;;  %v69_v32 = vld [vmem:[%s400_s3] sm:$0xff]  ;;  %v125_v33 = vld [vmem:[%s402_s5 + $0x78] sm:$0xff]  ;;  %v124_v34 = vld [vmem:[%s402_s5 + $0x70] sm:$0xff] }
  0x15   :  { %96 = vmatpush.msra.mxu1 %v77_v17  ;;  %130 = vmatpush.msra.mxu2 %v125_v33  ;;  %v123_v35 = vld [vmem:[%s402_s5 + $0x68] sm:$0xff]  ;;  %v122_v36 = vld [vmem:[%s402_s5 + $0x60] sm:$0xff]  ;;  %v121_v37 = vld [vmem:[%s402_s5 + $0x58] sm:$0xff] }
  0x16   :  { %58 = vmatpush.msra.mxu0 %v33_v18  ;;  %v120_v38 = vld [vmem:[%s402_s5 + $0x50] sm:$0xff]  ;;  %v119_v39 = vld [vmem:[%s402_s5 + $0x48] sm:$0xff]  ;;  %v118_v40 = vld [vmem:[%s402_s5 + $0x40] sm:$0xff] }
  0x17   :  { %97 = vmatpush.msra.mxu1 %v76_v19  ;;  %131 = vmatpush.msra.mxu2 %v124_v34  ;;  %v117_v41 = vld [vmem:[%s402_s5 + $0x38] sm:$0xff]  ;;  %v116_v42 = vld [vmem:[%s402_s5 + $0x30] sm:$0xff]  ;;  %v115_v43 = vld [vmem:[%s402_s5 + $0x28] sm:$0xff] }
  0x18   :  { %59 = vmatpush.msra.mxu0 %v32_v20  ;;  %v114_v44 = vld [vmem:[%s402_s5 + $0x20] sm:$0xff]  ;;  %v113_v45 = vld [vmem:[%s402_s5 + $0x18] sm:$0xff]  ;;  %v112_v50 = vld [vmem:[%s402_s5 + $0x10] sm:$0xff] }
  0x19   :  { %98 = vmatpush.msra.mxu1 %v75_v21  ;;  %132 = vmatpush.msra.mxu2 %v123_v35  ;;  %v168_v46 = vld [vmem:[%s399_s2] ss:$0 sm:$0xff]  ;;  %v111_v51 = vld [vmem:[%s402_s5 + $0x8] sm:$0xff] }
  0x1a   :  { %60 = vmatpush.msra.mxu0 %v31_v22  ;;  %v110_v52 = vld [vmem:[%s402_s5] sm:$0xff] }
  0x1b   :  { %99 = vmatpush.msra.mxu1 %v74_v23  ;;  %133 = vmatpush.msra.mxu2 %v122_v36  ;;  %v169_v53 = vld [vmem:[%s401_s4] ss:$0 sm:$0xff] }
  0x1c   :  { %61 = vmatpush.msra.mxu0 %v30_v24  ;;  %v170_v57 = vld [vmem:[%s403_s6] ss:$0 sm:$0xff] }
  0x1d   :  { %100 = vmatpush.msra.mxu1 %v73_v25  ;;  %134 = vmatpush.msra.mxu2 %v121_v37 }
  0x1e   :  { %62 = vmatpush.msra.mxu0 %v29_v26 }
  0x1f   :  { %101 = vmatpush.msra.mxu1 %v72_v27  ;;  %135 = vmatpush.msra.mxu2 %v120_v38 }
  0x20   :  { %63 = vmatpush.msra.mxu0 %v28_v28 }
  0x21   :  { %64 = vmatmul.f32.vlgmr.msra.gmra.mxu0 %v27_v29  ;;  %102 = vmatpush.msra.mxu1 %v71_v30 }
  0x22   :  { %136 = vmatpush.msra.mxu2 %v119_v39 }
  0x23   :  { %103 = vmatpush.msra.mxu1 %v70_v31 }
  0x24   :  { %137 = vmatpush.msra.mxu2 %v118_v40 }
  0x25   :  { %104 = vmatpush.msra.mxu1 %v69_v32 }
  0x26   :  { %138 = vmatpush.msra.mxu2 %v117_v41 }
  0x28   :  { %139 = vmatpush.msra.mxu2 %v116_v42 }
  0x2a   :  { %140 = vmatpush.msra.mxu2 %v115_v43 }
  0x2c   :  { %141 = vmatpush.msra.mxu2 %v114_v44 }
  0x2e   :  { %142 = vmatpush.msra.mxu2 %v113_v45 }
  0x30   :  { %143 = vmatpush.msra.mxu2 %v112_v50 }
  0x32   :  { %144 = vmatpush.msra.mxu2 %v111_v51 }
  0x34   :  { %145 = vmatpush.msra.mxu2 %v110_v52 }
  0x9e   :  { %v65_v47 = vpop.f32.mrf.mxu0 }
  0x9f   :  { %v66_v48 = vadd.f32 %v168_v46, %v65_v47 }
  0xa1   :  { %v68_v49 = vmax.f32 %v66_v48, 0.0 }
  0xa3   :  { %105 = vmatmul.f32.vlgmr.msra.gmra.mxu1 %v68_v49 }
 0x120   :  { %v106_v54 = vpop.f32.mrf.mxu1 }
 0x121   :  { %v107_v55 = vadd.f32 %v169_v53, %v106_v54 }
 0x123   :  { %v109_v56 = vmax.f32 %v107_v55, 0.0 }
 0x125   :  { %146 = vmatmul.f32.vlgmr.msra.gmra.mxu2 %v109_v56 }
 0x1a8   :  { %v147_v58 = vpop.f32.mrf.mxu2 }
 0x1a9   :  { %v148_v59 = vadd.f32 %v170_v57, %v147_v58 }
 0x1ab   :  { %150 = vst [vmem:[#allocation2] sm:$0xff] %v148_v59 }
 0x1ac   :  { %161 = dma.vmem_to_hbm [thread:$0]  %s157_s30, 128, %s159_s10, [#allocation3]  }
 0x1ad   :  { %195 = dma.done.wait [#allocation3], 128  }
 0x1ae   :  { %196 = vsyncadd [#allocation3], 4294967168 }
 0x1af   :  { %166 = vsyncpa [#allocation3], 1 }

</bundles_post_ra>
